<compile_context>
chip_gen: v7x
topology: tpu7x:2x2x1
jax: 0.10.0
libtpu: 0.0.40
codegen_flags: <defaults>
</compile_context>

<pallas_src>
import functools

import jax
import jax.numpy as jnp
from jax import lax
from jax.experimental import pallas as pl
from jax.experimental.pallas import tpu as pltpu


# ----------------------------------------------------------------------------
# Kernel: one (batch, query-tile) step.
#   q  = x_qtile @ Wq              (tq, C)    one MXU call
#   kv = x_full  @ [Wk | Wv]       (T, 2C)    one MXU call
#   per head h: causal softmax((q_h k_h^T) * C^-0.5) @ v_h -> concat buffer
#   out = concat @ Wproj + b       (tq, C)    one full-depth MXU call
# ----------------------------------------------------------------------------
def _mha_kernel(xq_ref, xf_ref, wqkv_ref, wproj_ref, b_ref, o_ref, cat_ref, *,
                num_heads, head_size, n_embed, q_tile):
    C = n_embed
    Hs = head_size

    xq = xq_ref[0]                        # (tq, C)  -- MXU operand dtype (f32 or bf16)
    xf = xf_ref[0]                        # (T,  C)
    wqkv = wqkv_ref[...]                  # (C, 3C) = [Wq | Wk | Wv]
    wproj = wproj_ref[...]                # (C, C)  in (in, out) layout
    T = xf.shape[0]
    mxu_dtype = xq.dtype                  # bf16 recommended at realistic sizes

    # Fused QKV projection: q only for this query tile, k/v for the full sequence.
    q = jnp.dot(xq, wqkv[:, 0:C], preferred_element_type=jnp.float32).astype(mxu_dtype)
    kv = jnp.dot(xf, wqkv[:, C:3 * C], preferred_element_type=jnp.float32)  # (T, 2C)
    k = kv[:, 0:C].astype(mxu_dtype)
    v = kv[:, C:2 * C].astype(mxu_dtype)

    # Reference scales by n_embed (C ** -0.5), not head_size ** -0.5.
    scale = jnp.float32(C) ** jnp.float32(-0.5)
    neg_big = jnp.float32(jnp.finfo(jnp.float32).min)   # finite mask value

    # Causal mask for this query tile (global row offset from the q-tile index).
    q_off = pl.program_id(1) * q_tile
    row = lax.broadcasted_iota(jnp.int32, (q_tile, T), 0) + q_off
    col = lax.broadcasted_iota(jnp.int32, (q_tile, T), 1)
    causal = row >= col

    # num_heads is small & static here -> unrolled loop, all slices static.
    for h in range(num_heads):
        lo = h * Hs
        hi = lo + Hs
        # q_h @ k_h^T: contract last dims directly (no explicit transpose -> XLU free).
        s = lax.dot_general(
            q[:, lo:hi], k[:, lo:hi],
            dimension_numbers=(((1,), (1,)), ((), ())),
            preferred_element_type=jnp.float32) * scale            # (tq, T) f32
        s = jnp.where(causal, s, neg_big)

        # Numerically-stable softmax in f32, EXACT denominator.
        s = s - jnp.max(s, axis=-1, keepdims=True)
        p = jnp.exp(s)
        p = p / jnp.sum(p, axis=-1, keepdims=True)

        head_o = jnp.dot(p.astype(mxu_dtype), v[:, lo:hi],
                         preferred_element_type=jnp.float32)        # (tq, Hs)
        # Static-offset write into the VMEM concat buffer (replaces the old
        # folded per-head projection + accumulator adds).
        cat_ref[:, lo:hi] = head_o

    # One full-depth (tq, C) @ (C, C) output projection + bias, lane-dense store.
    out = jnp.dot(cat_ref[...].astype(mxu_dtype), wproj,
                  preferred_element_type=jnp.float32)               # (tq, C)
    o_ref[0] = (out + b_ref[...]).astype(o_ref.dtype)


# ----------------------------------------------------------------------------
# One-time parameter preprocessing (done at init, NOT per forward call).
# ----------------------------------------------------------------------------
def pack_mha_params(wq, wk, wv, w_proj, b_proj, compute_dtype=jnp.float32):
    """wq/wk/wv: (H, C, Hs); w_proj: (C, C) in (in, out); b_proj: (C,)."""
    H, C, Hs = wq.shape

    def pack(w):                                   # (H, C, Hs) -> (C, H*Hs)
        return jnp.transpose(w, (1, 0, 2)).reshape(C, H * Hs)

    wqkv = jnp.concatenate([pack(wq), pack(wk), pack(wv)], axis=1)   # (C, 3C)
    return (wqkv.astype(compute_dtype),
            w_proj.astype(compute_dtype),
            b_proj.reshape(1, C).astype(jnp.float32))                # bias stays f32


# ----------------------------------------------------------------------------
# Wrapper: no repacking here; just pallas_call with query-tiled grid.
# ----------------------------------------------------------------------------
def multi_head_attention(x, wqkv, w_proj, b_proj2d, *, num_heads, head_size,
                         q_tile=None):
    """x: (B, T, C) (f32 or bf16); wqkv: (C, 3C); w_proj: (C, C); b_proj2d: (1, C)."""
    B, T, C = x.shape
    assert num_heads * head_size == C
    if q_tile is None:
        q_tile = min(T, 128)
    assert T % q_tile == 0
    n_q = T // q_tile

    kernel = functools.partial(_mha_kernel, num_heads=num_heads,
                               head_size=head_size, n_embed=C, q_tile=q_tile)

    return pl.pallas_call(
        kernel,
        out_shape=jax.ShapeDtypeStruct((B, T, C), jnp.float32),
        grid=(B, n_q),
        in_specs=[
            pl.BlockSpec((1, q_tile, C), lambda b, qi: (b, qi, 0)),  # x -> q rows (DMA slices)
            pl.BlockSpec((1, T, C), lambda b, qi: (b, 0, 0)),        # x -> full seq for K/V
            pl.BlockSpec((C, 3 * C), lambda b, qi: (0, 0)),          # Wqkv (grid-invariant)
            pl.BlockSpec((C, C), lambda b, qi: (0, 0)),              # Wproj (grid-invariant)
            pl.BlockSpec((1, C), lambda b, qi: (0, 0)),              # bias
        ],
        out_specs=pl.BlockSpec((1, q_tile, C), lambda b, qi: (b, qi, 0)),
        scratch_shapes=[pltpu.VMEM((q_tile, C), jnp.float32)],       # head-concat buffer
        compiler_params=pltpu.CompilerParams(
            dimension_semantics=("parallel", "parallel"),            # batch x q-tiles
            vmem_limit_bytes=64 * 1024 * 1024),
    )(x, x, wqkv, w_proj, b_proj2d)


# ----------------------------------------------------------------------------
# Pure-JAX reference (mirrors the PyTorch forward in eval mode)
# ----------------------------------------------------------------------------
def reference(x, wq, wk, wv, w_proj, b_proj):
    B, T, C = x.shape
    H = wq.shape[0]
    outs = []
    for h in range(H):
        q = x @ wq[h]
        k = x @ wk[h]
        v = x @ wv[h]
        wei = (q @ jnp.swapaxes(k, -2, -1)) * (C ** -0.5)
        mask = jnp.tril(jnp.ones((T, T), dtype=bool))
        wei = jnp.where(mask, wei, -jnp.inf)
        wei = jax.nn.softmax(wei, axis=-1)
        outs.append(wei @ v)
    cat = jnp.concatenate(outs, axis=-1)
    return cat @ w_proj + b_proj


if __name__ == "__main__":
    # Module hyperparameters (small, consistent with the forward pass).
    num_heads = 4
    head_size = 8
    n_embed = num_heads * head_size   # 32
    block_size = 8                    # seq length T == block_size
    B, T = 2, block_size

    key = jax.random.PRNGKey(0)
    kx, kq, kk, kv, kp, kb = jax.random.split(key, 6)

    x = jax.random.normal(kx, (B, T, n_embed), dtype=jnp.float32)

    # Per-head projection weights, stored as (H, C_in, head_size) so the kernel
    # applies them as x @ W (equivalent to PyTorch Linear's x @ W.T).
    scale = 1.0 / jnp.sqrt(jnp.float32(n_embed))
    wq = jax.random.normal(kq, (num_heads, n_embed, head_size), jnp.float32) * scale
    wk = jax.random.normal(kk, (num_heads, n_embed, head_size), jnp.float32) * scale
    wv = jax.random.normal(kv, (num_heads, n_embed, head_size), jnp.float32) * scale

    # Output projection: stored as (C_in, C_out) = W.T of PyTorch's (out, in).
    w_proj = jax.random.normal(kp, (n_embed, n_embed), jnp.float32) * scale
    b_proj = jax.random.normal(kb, (n_embed,), jnp.float32) * 0.01

    ref = reference(x, wq, wk, wv, w_proj, b_proj)

    # --- f32 path: one-time packing, then the fused kernel; tight check. ---
    wqkv_f32, wproj_f32, b2d = pack_mha_params(wq, wk, wv, w_proj, b_proj,
                                               compute_dtype=jnp.float32)
    out = multi_head_attention(x, wqkv_f32, wproj_f32, b2d,
                               num_heads=num_heads, head_size=head_size)
    out = jax.block_until_ready(out)
    assert out.shape == (B, T, n_embed)
    assert jnp.allclose(out, ref, atol=2e-3, rtol=2e-3), "f32 mismatch vs reference"

    # --- bf16 MXU-operand path (recommended at realistic sizes): loose check. ---
    wqkv_bf, wproj_bf, b2d_bf = pack_mha_params(wq, wk, wv, w_proj, b_proj,
                                                compute_dtype=jnp.bfloat16)
    out_bf = multi_head_attention(x.astype(jnp.bfloat16), wqkv_bf, wproj_bf, b2d_bf,
                                  num_heads=num_heads, head_size=head_size)
    out_bf = jax.block_until_ready(out_bf)
    assert bool(jnp.isfinite(out_bf).all())
    max_err = float(jnp.max(jnp.abs(out_bf - ref)))
    assert max_err < 0.25, f"bf16 path too far from reference: {max_err}"

    print("KERNEL_OK")
</pallas_src>

<mosaic_0001>
module attributes {stable_mosaic.version = 11 : i64} {
  func.func @_mha_kernel(%arg0: i32, %arg1: i32, %arg2: memref<1x8x32xf32, #tpu.memory_space<vmem>>, %arg3: memref<1x8x32xf32, #tpu.memory_space<vmem>>, %arg4: memref<32x96xf32, #tpu.memory_space<vmem>>, %arg5: memref<32x32xf32, #tpu.memory_space<vmem>>, %arg6: memref<1x32xf32, #tpu.memory_space<vmem>>, %arg7: memref<1x8x32xf32, #tpu.memory_space<vmem>>, %arg8: memref<8x32xf32, #tpu.memory_space<vmem>>) attributes {dimension_semantics = [#tpu.dimension_semantics<parallel>, #tpu.dimension_semantics<parallel>], iteration_bounds = array<i64: 2, 1>, scalar_prefetch = 0 : i64, scratch_operands = 1 : i64, tpu.core_type = #tpu.core_type<tc>, window_params = [{transform_indices = @transform_0, window_bounds = array<i64: 1, 8, 32>}, {transform_indices = @transform_1, window_bounds = array<i64: 1, 8, 32>}, {pipeline_mode = #tpu.pipeline_mode<synchronous>, transform_indices = @transform_2, window_bounds = array<i64: 32, 96>}, {pipeline_mode = #tpu.pipeline_mode<synchronous>, transform_indices = @transform_3, window_bounds = array<i64: 32, 32>}, {pipeline_mode = #tpu.pipeline_mode<synchronous>, transform_indices = @transform_4, window_bounds = array<i64: 1, 32>}, {transform_indices = @transform_5, window_bounds = array<i64: 1, 8, 32>}]} {
    %c0 = arith.constant 0 : index
    %c0_0 = arith.constant 0 : index
    %c0_1 = arith.constant 0 : index
    %0 = vector.load %arg2[%c0, %c0_0, %c0_1] : memref<1x8x32xf32, #tpu.memory_space<vmem>>, vector<1x8x32xf32>
    %1 = vector.shape_cast %0 : vector<1x8x32xf32> to vector<8x32xf32>
    %c0_2 = arith.constant 0 : index
    %c0_3 = arith.constant 0 : index
    %c0_4 = arith.constant 0 : index
    %2 = vector.load %arg3[%c0_2, %c0_3, %c0_4] : memref<1x8x32xf32, #tpu.memory_space<vmem>>, vector<1x8x32xf32>
    %3 = vector.shape_cast %2 : vector<1x8x32xf32> to vector<8x32xf32>
    %c0_5 = arith.constant 0 : index
    %c0_6 = arith.constant 0 : index
    %4 = vector.load %arg4[%c0_5, %c0_6] : memref<32x96xf32, #tpu.memory_space<vmem>>, vector<32x96xf32>
    %c0_7 = arith.constant 0 : index
    %c0_8 = arith.constant 0 : index
    %5 = vector.load %arg5[%c0_7, %c0_8] : memref<32x32xf32, #tpu.memory_space<vmem>>, vector<32x32xf32>
    %6 = vector.extract_strided_slice %4 {offsets = [0, 0], sizes = [32, 32], strides = [1, 1]} : vector<32x96xf32> to vector<32x32xf32>
    %cst = arith.constant dense<0.000000e+00> : vector<8x32xf32>
    %7 = tpu.matmul %1, %6, %cst {dimension_numbers = #tpu.dot_dimension_numbers<[1], [0], [0], [1], [0, 0, 1, 1], [], []>} : vector<8x32xf32>, vector<32x32xf32>, vector<8x32xf32> -> vector<8x32xf32>
    %8 = vector.extract_strided_slice %4 {offsets = [0, 32], sizes = [32, 64], strides = [1, 1]} : vector<32x96xf32> to vector<32x64xf32>
    %cst_9 = arith.constant dense<0.000000e+00> : vector<8x64xf32>
    %9 = tpu.matmul %3, %8, %cst_9 {dimension_numbers = #tpu.dot_dimension_numbers<[1], [0], [0], [1], [0, 0, 1, 1], [], []>} : vector<8x32xf32>, vector<32x64xf32>, vector<8x64xf32> -> vector<8x64xf32>
    %10 = vector.extract_strided_slice %9 {offsets = [0, 0], sizes = [8, 32], strides = [1, 1]} : vector<8x64xf32> to vector<8x32xf32>
    %11 = vector.extract_strided_slice %9 {offsets = [0, 32], sizes = [8, 32], strides = [1, 1]} : vector<8x64xf32> to vector<8x32xf32>
    %cst_10 = arith.constant 3.200000e+01 : f32
    %cst_11 = arith.constant -5.000000e-01 : f32
    %12 = math.powf %cst_10, %cst_11 : f32
    %c8_i32 = arith.constant 8 : i32
    %13 = arith.muli %arg1, %c8_i32 : i32
    %14 = tpu.iota {dimensions = array<i32: 0>} : vector<8x8xi32>
    %15 = vector.broadcast %13 : i32 to vector<8x8xi32>
    %16 = arith.addi %14, %15 : vector<8x8xi32>
    %17 = tpu.iota {dimensions = array<i32: 1>} : vector<8x8xi32>
    %18 = arith.cmpi sge, %16, %17 : vector<8x8xi32>
    %19 = vector.extract_strided_slice %7 {offsets = [0, 0], sizes = [8, 8], strides = [1, 1]} : vector<8x32xf32> to vector<8x8xf32>
    %20 = vector.extract_strided_slice %10 {offsets = [0, 0], sizes = [8, 8], strides = [1, 1]} : vector<8x32xf32> to vector<8x8xf32>
    %cst_12 = arith.constant dense<0.000000e+00> : vector<8x8xf32>
    %21 = tpu.matmul %19, %20, %cst_12 {dimension_numbers = #tpu.dot_dimension_numbers<[1], [1], [0], [0], [0, 0, 1, 0], [], []>} : vector<8x8xf32>, vector<8x8xf32>, vector<8x8xf32> -> vector<8x8xf32>
    %22 = vector.broadcast %12 : f32 to vector<8x8xf32>
    %23 = arith.mulf %21, %22 : vector<8x8xf32>
    %cst_13 = arith.constant -3.40282347E+38 : f32
    %24 = vector.broadcast %cst_13 : f32 to vector<8x8xf32>
    %25 = arith.select %18, %23, %24 : vector<8x8xi1>, vector<8x8xf32>
    %cst_14 = arith.constant dense<0xFF800000> : vector<8xf32>
    %26 = vector.multi_reduction <maximumf>, %25, %cst_14 [1] : vector<8x8xf32> to vector<8xf32>
    %27 = vector.shape_cast %26 : vector<8xf32> to vector<8x1xf32>
    %28 = vector.broadcast %27 : vector<8x1xf32> to vector<8x8xf32>
    %29 = arith.subf %25, %28 : vector<8x8xf32>
    %30 = math.exp %29 : vector<8x8xf32>
    %cst_15 = arith.constant dense<0.000000e+00> : vector<8xf32>
    %31 = vector.multi_reduction <add>, %30, %cst_15 [1] : vector<8x8xf32> to vector<8xf32>
    %32 = vector.shape_cast %31 : vector<8xf32> to vector<8x1xf32>
    %33 = vector.broadcast %32 : vector<8x1xf32> to vector<8x8xf32>
    %34 = arith.divf %30, %33 : vector<8x8xf32>
    %35 = vector.extract_strided_slice %11 {offsets = [0, 0], sizes = [8, 8], strides = [1, 1]} : vector<8x32xf32> to vector<8x8xf32>
    %cst_16 = arith.constant dense<0.000000e+00> : vector<8x8xf32>
    %36 = tpu.matmul %34, %35, %cst_16 {dimension_numbers = #tpu.dot_dimension_numbers<[1], [0], [0], [1], [0, 0, 1, 1], [], []>} : vector<8x8xf32>, vector<8x8xf32>, vector<8x8xf32> -> vector<8x8xf32>
    %c0_17 = arith.constant 0 : index
    %c0_18 = arith.constant 0 : index
    %37 = vector.load %arg8[%c0_17, %c0_18] : memref<8x32xf32, #tpu.memory_space<vmem>>, vector<8x8xf32>
    tpu.vector_store %arg8[%c0_17, %c0_18], %36 {strides = array<i32>} : memref<8x32xf32, #tpu.memory_space<vmem>>, vector<8x8xf32>,
    %38 = vector.extract_strided_slice %7 {offsets = [0, 8], sizes = [8, 8], strides = [1, 1]} : vector<8x32xf32> to vector<8x8xf32>
    %39 = vector.extract_strided_slice %10 {offsets = [0, 8], sizes = [8, 8], strides = [1, 1]} : vector<8x32xf32> to vector<8x8xf32>
    %cst_19 = arith.constant dense<0.000000e+00> : vector<8x8xf32>
    %40 = tpu.matmul %38, %39, %cst_19 {dimension_numbers = #tpu.dot_dimension_numbers<[1], [1], [0], [0], [0, 0, 1, 0], [], []>} : vector<8x8xf32>, vector<8x8xf32>, vector<8x8xf32> -> vector<8x8xf32>
    %41 = vector.broadcast %12 : f32 to vector<8x8xf32>
    %42 = arith.mulf %40, %41 : vector<8x8xf32>
    %cst_20 = arith.constant -3.40282347E+38 : f32
    %43 = vector.broadcast %cst_20 : f32 to vector<8x8xf32>
    %44 = arith.select %18, %42, %43 : vector<8x8xi1>, vector<8x8xf32>
    %cst_21 = arith.constant dense<0xFF800000> : vector<8xf32>
    %45 = vector.multi_reduction <maximumf>, %44, %cst_21 [1] : vector<8x8xf32> to vector<8xf32>
    %46 = vector.shape_cast %45 : vector<8xf32> to vector<8x1xf32>
    %47 = vector.broadcast %46 : vector<8x1xf32> to vector<8x8xf32>
    %48 = arith.subf %44, %47 : vector<8x8xf32>
    %49 = math.exp %48 : vector<8x8xf32>
    %cst_22 = arith.constant dense<0.000000e+00> : vector<8xf32>
    %50 = vector.multi_reduction <add>, %49, %cst_22 [1] : vector<8x8xf32> to vector<8xf32>
    %51 = vector.shape_cast %50 : vector<8xf32> to vector<8x1xf32>
    %52 = vector.broadcast %51 : vector<8x1xf32> to vector<8x8xf32>
    %53 = arith.divf %49, %52 : vector<8x8xf32>
    %54 = vector.extract_strided_slice %11 {offsets = [0, 8], sizes = [8, 8], strides = [1, 1]} : vector<8x32xf32> to vector<8x8xf32>
    %cst_23 = arith.constant dense<0.000000e+00> : vector<8x8xf32>
    %55 = tpu.matmul %53, %54, %cst_23 {dimension_numbers = #tpu.dot_dimension_numbers<[1], [0], [0], [1], [0, 0, 1, 1], [], []>} : vector<8x8xf32>, vector<8x8xf32>, vector<8x8xf32> -> vector<8x8xf32>
    %c0_24 = arith.constant 0 : index
    %c8 = arith.constant 8 : index
    %56 = vector.load %arg8[%c0_24, %c8] : memref<8x32xf32, #tpu.memory_space<vmem>>, vector<8x8xf32>
    tpu.vector_store %arg8[%c0_24, %c8], %55 {strides = array<i32>} : memref<8x32xf32, #tpu.memory_space<vmem>>, vector<8x8xf32>,
    %57 = vector.extract_strided_slice %7 {offsets = [0, 16], sizes = [8, 8], strides = [1, 1]} : vector<8x32xf32> to vector<8x8xf32>
    %58 = vector.extract_strided_slice %10 {offsets = [0, 16], sizes = [8, 8], strides = [1, 1]} : vector<8x32xf32> to vector<8x8xf32>
    %cst_25 = arith.constant dense<0.000000e+00> : vector<8x8xf32>
    %59 = tpu.matmul %57, %58, %cst_25 {dimension_numbers = #tpu.dot_dimension_numbers<[1], [1], [0], [0], [0, 0, 1, 0], [], []>} : vector<8x8xf32>, vector<8x8xf32>, vector<8x8xf32> -> vector<8x8xf32>
    %60 = vector.broadcast %12 : f32 to vector<8x8xf32>
    %61 = arith.mulf %59, %60 : vector<8x8xf32>
    %cst_26 = arith.constant -3.40282347E+38 : f32
    %62 = vector.broadcast %cst_26 : f32 to vector<8x8xf32>
    %63 = arith.select %18, %61, %62 : vector<8x8xi1>, vector<8x8xf32>
    %cst_27 = arith.constant dense<0xFF800000> : vector<8xf32>
    %64 = vector.multi_reduction <maximumf>, %63, %cst_27 [1] : vector<8x8xf32> to vector<8xf32>
    %65 = vector.shape_cast %64 : vector<8xf32> to vector<8x1xf32>
    %66 = vector.broadcast %65 : vector<8x1xf32> to vector<8x8xf32>
    %67 = arith.subf %63, %66 : vector<8x8xf32>
    %68 = math.exp %67 : vector<8x8xf32>
    %cst_28 = arith.constant dense<0.000000e+00> : vector<8xf32>
    %69 = vector.multi_reduction <add>, %68, %cst_28 [1] : vector<8x8xf32> to vector<8xf32>
    %70 = vector.shape_cast %69 : vector<8xf32> to vector<8x1xf32>
    %71 = vector.broadcast %70 : vector<8x1xf32> to vector<8x8xf32>
    %72 = arith.divf %68, %71 : vector<8x8xf32>
    %73 = vector.extract_strided_slice %11 {offsets = [0, 16], sizes = [8, 8], strides = [1, 1]} : vector<8x32xf32> to vector<8x8xf32>
    %cst_29 = arith.constant dense<0.000000e+00> : vector<8x8xf32>
    %74 = tpu.matmul %72, %73, %cst_29 {dimension_numbers = #tpu.dot_dimension_numbers<[1], [0], [0], [1], [0, 0, 1, 1], [], []>} : vector<8x8xf32>, vector<8x8xf32>, vector<8x8xf32> -> vector<8x8xf32>
    %c0_30 = arith.constant 0 : index
    %c16 = arith.constant 16 : index
    %75 = vector.load %arg8[%c0_30, %c16] : memref<8x32xf32, #tpu.memory_space<vmem>>, vector<8x8xf32>
    tpu.vector_store %arg8[%c0_30, %c16], %74 {strides = array<i32>} : memref<8x32xf32, #tpu.memory_space<vmem>>, vector<8x8xf32>,
    %76 = vector.extract_strided_slice %7 {offsets = [0, 24], sizes = [8, 8], strides = [1, 1]} : vector<8x32xf32> to vector<8x8xf32>
    %77 = vector.extract_strided_slice %10 {offsets = [0, 24], sizes = [8, 8], strides = [1, 1]} : vector<8x32xf32> to vector<8x8xf32>
    %cst_31 = arith.constant dense<0.000000e+00> : vector<8x8xf32>
    %78 = tpu.matmul %76, %77, %cst_31 {dimension_numbers = #tpu.dot_dimension_numbers<[1], [1], [0], [0], [0, 0, 1, 0], [], []>} : vector<8x8xf32>, vector<8x8xf32>, vector<8x8xf32> -> vector<8x8xf32>
    %79 = vector.broadcast %12 : f32 to vector<8x8xf32>
    %80 = arith.mulf %78, %79 : vector<8x8xf32>
    %cst_32 = arith.constant -3.40282347E+38 : f32
    %81 = vector.broadcast %cst_32 : f32 to vector<8x8xf32>
    %82 = arith.select %18, %80, %81 : vector<8x8xi1>, vector<8x8xf32>
    %cst_33 = arith.constant dense<0xFF800000> : vector<8xf32>
    %83 = vector.multi_reduction <maximumf>, %82, %cst_33 [1] : vector<8x8xf32> to vector<8xf32>
    %84 = vector.shape_cast %83 : vector<8xf32> to vector<8x1xf32>
    %85 = vector.broadcast %84 : vector<8x1xf32> to vector<8x8xf32>
    %86 = arith.subf %82, %85 : vector<8x8xf32>
    %87 = math.exp %86 : vector<8x8xf32>
    %cst_34 = arith.constant dense<0.000000e+00> : vector<8xf32>
    %88 = vector.multi_reduction <add>, %87, %cst_34 [1] : vector<8x8xf32> to vector<8xf32>
    %89 = vector.shape_cast %88 : vector<8xf32> to vector<8x1xf32>
    %90 = vector.broadcast %89 : vector<8x1xf32> to vector<8x8xf32>
    %91 = arith.divf %87, %90 : vector<8x8xf32>
    %92 = vector.extract_strided_slice %11 {offsets = [0, 24], sizes = [8, 8], strides = [1, 1]} : vector<8x32xf32> to vector<8x8xf32>
    %cst_35 = arith.constant dense<0.000000e+00> : vector<8x8xf32>
    %93 = tpu.matmul %91, %92, %cst_35 {dimension_numbers = #tpu.dot_dimension_numbers<[1], [0], [0], [1], [0, 0, 1, 1], [], []>} : vector<8x8xf32>, vector<8x8xf32>, vector<8x8xf32> -> vector<8x8xf32>
    %c0_36 = arith.constant 0 : index
    %c24 = arith.constant 24 : index
    %94 = vector.load %arg8[%c0_36, %c24] : memref<8x32xf32, #tpu.memory_space<vmem>>, vector<8x8xf32>
    tpu.vector_store %arg8[%c0_36, %c24], %93 {strides = array<i32>} : memref<8x32xf32, #tpu.memory_space<vmem>>, vector<8x8xf32>,
    %c0_37 = arith.constant 0 : index
    %c0_38 = arith.constant 0 : index
    %95 = vector.load %arg8[%c0_37, %c0_38] : memref<8x32xf32, #tpu.memory_space<vmem>>, vector<8x32xf32>
    %cst_39 = arith.constant dense<0.000000e+00> : vector<8x32xf32>
    %96 = tpu.matmul %95, %5, %cst_39 {dimension_numbers = #tpu.dot_dimension_numbers<[1], [0], [0], [1], [0, 0, 1, 1], [], []>} : vector<8x32xf32>, vector<32x32xf32>, vector<8x32xf32> -> vector<8x32xf32>
    %c0_40 = arith.constant 0 : index
    %c0_41 = arith.constant 0 : index
    %97 = vector.load %arg6[%c0_40, %c0_41] : memref<1x32xf32, #tpu.memory_space<vmem>>, vector<1x32xf32>
    %98 = vector.broadcast %97 : vector<1x32xf32> to vector<8x32xf32>
    %99 = arith.addf %96, %98 : vector<8x32xf32>
    %c0_42 = arith.constant 0 : index
    %c0_43 = arith.constant 0 : index
    %c0_44 = arith.constant 0 : index
    %100 = vector.load %arg7[%c0_42, %c0_43, %c0_44] : memref<1x8x32xf32, #tpu.memory_space<vmem>>, vector<1x8x32xf32>
    %101 = vector.shape_cast %100 : vector<1x8x32xf32> to vector<8x32xf32>
    %102 = vector.shape_cast %99 : vector<8x32xf32> to vector<1x8x32xf32>
    tpu.vector_store %arg7[%c0_42, %c0_43, %c0_44], %102 {strides = array<i32>} : memref<1x8x32xf32, #tpu.memory_space<vmem>>, vector<1x8x32xf32>,
    return
  }
  func.func @transform_0(%arg0: i32, %arg1: i32) -> (i32, i32, i32) {
    %c0_i32 = arith.constant 0 : i32
    %c0_i32_0 = arith.constant 0 : i32
    return %arg0, %arg1, %c0_i32 : i32, i32, i32
  }
  func.func @transform_1(%arg0: i32, %arg1: i32) -> (i32, i32, i32) {
    %c0_i32 = arith.constant 0 : i32
    %c0_i32_0 = arith.constant 0 : i32
    %c0_i32_1 = arith.constant 0 : i32
    return %arg0, %c0_i32, %c0_i32_0 : i32, i32, i32
  }
  func.func @transform_2(%arg0: i32, %arg1: i32) -> (i32, i32) {
    %c0_i32 = arith.constant 0 : i32
    %c0_i32_0 = arith.constant 0 : i32
    %c0_i32_1 = arith.constant 0 : i32
    return %c0_i32, %c0_i32_0 : i32, i32
  }
  func.func @transform_3(%arg0: i32, %arg1: i32) -> (i32, i32) {
    %c0_i32 = arith.constant 0 : i32
    %c0_i32_0 = arith.constant 0 : i32
    %c0_i32_1 = arith.constant 0 : i32
    return %c0_i32, %c0_i32_0 : i32, i32
  }
  func.func @transform_4(%arg0: i32, %arg1: i32) -> (i32, i32) {
    %c0_i32 = arith.constant 0 : i32
    %c0_i32_0 = arith.constant 0 : i32
    %c0_i32_1 = arith.constant 0 : i32
    return %c0_i32, %c0_i32_0 : i32, i32
  }
  func.func @transform_5(%arg0: i32, %arg1: i32) -> (i32, i32, i32) {
    %c0_i32 = arith.constant 0 : i32
    %c0_i32_0 = arith.constant 0 : i32
    return %arg0, %arg1, %c0_i32 : i32, i32, i32
  }
}

</mosaic_0001>

<bundles_post_ra>
// kernel: tpu_custom_call.1
= control target key start
LH: loop header
LB: loop body
LE: loop exit
PB: predicated region body
PF: predicated region fallthrough
CT: control target
= control target key end

     0   :  { %s2414_s0 = inlined_call_operand.hbm [shape: f32[2,8,32], index: 0, kind: input, shape index: {}]   ;;  %s2415_s1 = inlined_call_operand.hbm [shape: f32[2,8,32], index: 1, kind: input, shape index: {}]   ;;  %s2416_s2 = inlined_call_operand.hbm [shape: f32[32,96], index: 2, kind: input, shape index: {}]   ;;  %s2417_s3 = inlined_call_operand.hbm [shape: f32[32,32], index: 3, kind: input, shape index: {}]   ;;  %s2418_s4 = inlined_call_operand.hbm [shape: f32[1,32], index: 4, kind: input, shape index: {}]   ;;  %s2419_s5 = inlined_call_operand.hbm [shape: f32[2,8,32], index: 5, kind: output, shape index: {}]  }
   0x1   :  { %2425 = sst [smem:[#allocation19_spill]] %s2416_s2 }
   0x2   :  { %2426 = sst [smem:[#allocation20_spill]] %s2417_s3 }
   0x3   :  { %2427 = sst [smem:[#allocation21_spill]] %s2418_s4 }
   0x4   :  { %10 = vsyncpa [#allocation4], 0 }
   0x5   :  { %12 = vsyncpa [#allocation4 + $0x1], 0 }
   0x6   :  { %13 = vsyncpa [#allocation7], 0 }
   0x7   :  { %15 = vsyncpa [#allocation7 + $0x1], 0 }
   0x8   :  { %16 = vsyncpa [#allocation10], 0 }
   0x9   :  { %17 = vsyncpa [#allocation5], 0 }
   0xa   :  { %19 = vsyncpa [#allocation5 + $0x1], 0  ;;  %s2020_s18 = smov 0   ;;  %s2022_s19 = smov 0  }
   0xb   :  { %s2024_s20 = smov 0   ;;  %s2026_s21 = smov 0  }
   0xc   :  { %s2028_s22 = smov 0   ;;  %s2030_s23 = smov 0  }
   0xd LB: > { %s2051_s24 = sadd.s32 4294967295, %s1967_s23   ;;  %s1431_s25 = sadd.s32 4294967294, %s1967_s23   ;;  %s1967_s23 = sphi %s2030_s23, %s25_s23   ;;  %s1963_s22 = sphi %s2028_s22, %s2454_s22   ;;  %s1959_s21 = sphi %s2026_s21, %s2453_s21   ;;  %s1955_s20 = sphi %s2024_s20, %s2452_s20   ;;  %s1951_s19 = sphi %s2022_s19, %s2451_s19   ;;  %s1947_s18 = sphi %s2020_s18, %s2450_s18  }
   0xe   : > { %p59_p0 = scmp.ne.s32.totalorder %s1951_s19, %s1947_s18  ;;  %p2420_p1 = scmp.eq.s32.totalorder %s2051_s24, 0 }
   0xf   : > { %p180_p3 = scmp.eq.s32.totalorder %s1431_s25, 1  ;;  %p1432_p5 = scmp.ge.s32.totalorder %s1967_s23, 1 }
  0x10   : > { %p2060_p4 = por %p2420_p1, %p59_p0  ;;  %p187_p7 = scmp.lt.s32.totalorder %s1967_s23, 3 }
  0x11   : > { %p2065_p6 = por %p180_p3, %p59_p0  ;;  %s1969_s29 = smov [#allocation8]  }
  0x12   : > { %s2428_s26 = scalar_select %p2060_p4, 1, 0 }
  0x13   : > { %s2429_s27 = scalar_select %p2065_p6, 1, 0 }
  0x14   : > { %p2070_p8 = pnand %p1432_p5, %p187_p7  ;;  %s199_s30 = sshll.u32 %s1969_s29, 4  ;;  %s2074_s30 = int_to_ptr.vmem [resolvable:$true] %s199_s30 }
  0x15   : > { %2430 = sst [smem:[#allocation18_spill]] %s2429_s27  ;;  %s1970_s7 = smov [#allocation9]  }
  0x16   : > { %s2431_s28 = scalar_select %p2070_p8, 1, 0 }
  0x17   : > { %p1608_p9 = pneg %p2070_p8  ;;  %s212_s8 = sshll.u32 %s1970_s7, 4  ;;  %s2085_s8 = int_to_ptr.vmem [resolvable:$true] %s212_s8 }
  0x18   : > { %s1971_s9 = smov [#allocation11]   ;;  %s2433_s2 = sld [smem:[#allocation19_spill]] }
  0x19   : > { %p2081_p11 = pnand %p1608_p9, %p2420_p1  ;;  %s2087_s10 = sshll.u32 %s1971_s9, 4  ;;  %s227_s10 = int_to_ptr.vmem [resolvable:$true] %s2087_s10 }
  0x1b   : > { %p2097_p13 = pneg %p2081_p11 }
  0x1e   : > { %s1729_s13 = scalar_lea.hbm %s2433_s2, 512 }
  0x1f   : > { %p1730_p12 = scmp.ne.s32.totalorder %s2433_s2, %s1729_s13  ;;  %p1736_p5 = scmp.lt.u32.totalorder %s1729_s13, %s2433_s2 }
  0x21   : > { %p1732_p0 = pnand %p2097_p13, %p1730_p12 }
  0x23   : > { %p1733_p3 = pneg %p1732_p0 }
  0x25   : > { %p1738_p7 = pnand %p1736_p5, %p1733_p3 }
  0x27   : > { %1741 = shalt.err (!%p1738_p7)
}
  0x28   : > { %s1742_s29 = scalar_lea.vmem %s2074_s30, 512  ;;  %p1750_p2 = scmp.lt.s32.totalorder %s2074_s30, %s2074_s30 }
  0x29   : > { %p1743_p9 = scmp.ne.s32.totalorder %s2074_s30, %s1742_s29  ;;  %p1751_p6 = scmp.lt.s32.totalorder %s1742_s29, %s1742_s29 }
  0x2b   : > { %p1745_p10 = pnand %p1743_p9, %p2097_p13  ;;  %p1752_p12 = por %p1751_p6, %p1750_p2 }
  0x2d   : > { %p1746_p1 = pneg %p1745_p10 }
  0x2f   : > { %p1753_p0 = pnand %p1752_p12, %p1746_p1 }
  0x31   : > { %1756 = shalt.err (!%p1753_p0)
}
  0x32   : > { %s1972_s7 = smov 128   ;;  %s1973_s9 = smov 8  }
  0x33   : > { %1611 = dma.hbm_to_vmem [thread:$0]  (!%p2081_p11), %s2433_s2, 512, %s2074_s30, [#allocation7], %s1972_s7, %s1972_s7, %s1973_s9  }
  0x34   : > { %s2435_s3 = sld [smem:[#allocation20_spill]] }
  0x3a   : > { %s1757_s15 = scalar_lea.hbm %s2435_s3, 512 }
  0x3b   : > { %p1758_p2 = scmp.ne.s32.totalorder %s2435_s3, %s1757_s15  ;;  %p1764_p10 = scmp.lt.u32.totalorder %s1757_s15, %s2435_s3 }
  0x3d   : > { %p1760_p1 = pnand %p1758_p2, %p2097_p13 }
  0x3f   : > { %p1761_p6 = pneg %p1760_p1 }
  0x41   : > { %p1766_p3 = pnand %p1764_p10, %p1761_p6 }
  0x43   : > { %1769 = shalt.err (!%p1766_p3)
}
  0x44   : > { %s1770_s30 = scalar_lea.vmem %s2085_s8, 512  ;;  %p1778_p12 = scmp.lt.s32.totalorder %s2085_s8, %s2085_s8 }
  0x45   : > { %p1771_p5 = scmp.ne.s32.totalorder %s2085_s8, %s1770_s30  ;;  %p1779_p0 = scmp.lt.s32.totalorder %s1770_s30, %s1770_s30 }
  0x47   : > { %p1773_p7 = pnand %p1771_p5, %p2097_p13  ;;  %p1780_p2 = por %p1779_p0, %p1778_p12 }
  0x49   : > { %p1774_p9 = pneg %p1773_p7 }
  0x4b   : > { %p1781_p1 = pnand %p1780_p2, %p1774_p9 }
  0x4d   : > { %1784 = shalt.err (!%p1781_p1)
}
  0x4e   : > { %1614 = dma.hbm_to_vmem [thread:$0]  (!%p2081_p11), %s2435_s3, 512, %s2085_s8, [#allocation10], %s1972_s7, %s1972_s7, %s1973_s9  }
  0x4f   : > { %s2436_s4 = sld [smem:[#allocation21_spill]] }
  0x55   : > { %s1785_s14 = scalar_lea.hbm %s2436_s4, 16 }
  0x56   : > { %p1786_p6 = scmp.ne.s32.totalorder %s2436_s4, %s1785_s14  ;;  %p1792_p5 = scmp.lt.u32.totalorder %s1785_s14, %s2436_s4 }
  0x58   : > { %p1788_p10 = pnand %p1786_p6, %p2097_p13 }
  0x5a   : > { %p1789_p3 = pneg %p1788_p10 }
  0x5c   : > { %p1794_p7 = pnand %p1792_p5, %p1789_p3 }
  0x5e   : > { %1797 = shalt.err (!%p1794_p7)
}
  0x5f   : > { %s1798_s30 = scalar_lea.vmem %s227_s10, 16  ;;  %s1805_s8 = scalar_lea.vmem %s227_s10, 32 }
  0x60   : > { %p1799_p9 = scmp.ne.s32.totalorder %s227_s10, %s1798_s30  ;;  %p1806_p2 = scmp.lt.s32.totalorder %s227_s10, %s227_s10 }
  0x61   : > { %p1807_p1 = scmp.lt.s32.totalorder %s1805_s8, %s1798_s30 }
  0x62   : > { %p1801_p12 = pnand %p1799_p9, %p2097_p13 }
  0x63   : > { %p1808_p4 = por %p1807_p1, %p1806_p2 }
  0x64   : > { %p1802_p0 = pneg %p1801_p12 }
  0x66   : > { %p1809_p8 = pnand %p1808_p4, %p1802_p0 }
  0x68   : > { %1812 = shalt.err (!%p1809_p8)
}
  0x69   : > { %1617 = dma.hbm_to_vmem [thread:$0]  (!%p2081_p11), %s2436_s4, 16, %s227_s10, [#allocation10]  }
  0x6a   : > { %s46_s16 = sadd.s32 1, %s1955_s20  ;;  %s37_s27 = sadd.s32 1, %s1963_s22 }
  0x6b   : > { %p53_p4 = scmp.ne.s32.totalorder %s1955_s20, %s1951_s19  ;;  %p39_p8 = scmp.ge.s32.totalorder %s37_s27, 2 }
  0x6c   : > { %p54_p13 = scmp.eq.s32.totalorder %s1967_s23, 0  ;;  %p2437_p6 = scmp.eq.s32.totalorder %s2051_s24, 1 }
  0x6d   : > { %p1632_p3 = scmp.lt.s32.totalorder %s1967_s23, 2  ;;  %s2456_s27 = smov (%p39_p8, %s37_s27), 0 }
  0x6e   : > { %p2167_p10 = por %p2437_p6, %p53_p4  ;;  %p55_p5 = por %p54_p13, %p53_p4 }
  0x6f   : > { %s237_s11 = sand.u32 1, %s1955_s20   ;;  %s41_s12 = ssub.s32 %s1963_s22, %s2456_s27 }
  0x70   : > { %s2438_s6 = scalar_select %p2167_p10, 1, 0 }
  0x71   : > { %p44_p11 = scmp.eq.s32.totalorder %s41_s12, 0  ;;  %s2177_s10 = sshll.u32 %s237_s11, 3 }
  0x72   : > { %s1438_s13 = sshll.u32 %s1963_s22, 7  ;;  %s241_s29 = scalar_lea.vmem [#allocation3], %s2177_s10 }
  0x73   : > { %s2181_s14 = scalar_select %p44_p11, %s1955_s20, %s46_s16  }
  0x74   : > { %s2186_s25 = scalar_lea.hbm %s2414_s0, %s1438_s13  ;;  %s249_s30 = sshll.u32 %s241_s29, 4  ;;  %s2189_s30 = int_to_ptr.vmem [resolvable:$true] %s249_s30 }
  0x75   : > { %p2193_p7 = pnand %p1632_p3, %p55_p5  ;;  %s2200_s16 = scalar_lea.hbm %s2415_s1, %s1438_s13 }
  0x76   : > { %s256_s12 = sand.u32 1, %s1967_s23   ;;  %s238_s15 = scalar_lea.sflag [#allocation4], %s237_s11 }
  0x77   : > { %s1813_s17 = scalar_lea.hbm %s2186_s25, 128  ;;  %p1815_p12 = pneg %p2193_p7 }
  0x78   : > { %p1814_p9 = scmp.ne.s32.totalorder %s2186_s25, %s1813_s17  ;;  %s1818_s3 = scalar_lea.hbm %s2414_s0, 256 }
  0x79   : > { %p1819_p1 = scmp.lt.u32.totalorder %s2186_s25, %s2414_s0  ;;  %p1820_p4 = scmp.lt.u32.totalorder %s1818_s3, %s1813_s17 }
  0x7a   : > { %p1816_p0 = pnand %p1815_p12, %p1814_p9  ;;  %p1822_p13 = scmp.lt.u32.totalorder %s1813_s17, %s2186_s25 }
  0x7b   : > { %p1821_p8 = por %p1820_p4, %p1819_p1 }
  0x7c   : > { %p1817_p2 = pneg %p1816_p0 }
  0x7d   : > { %p1823_p6 = por %p1822_p13, %p1821_p8 }
  0x7f   : > { %p1824_p3 = pnand %p1823_p6, %p1817_p2 }
  0x81   : > { %1827 = shalt.err (!%p1824_p3)
}
  0x82   : > { %s1828_s11 = scalar_lea.vmem %s2189_s30, 128  ;;  %s1974_s2 = smov [#allocation3]  }
  0x83   : > { %p1829_p5 = scmp.ne.s32.totalorder %s2189_s30, %s1828_s11  ;;  %s1833_s13 = sshll.u32 %s1974_s2, 4  ;;  %s1834_s13 = int_to_ptr.vmem [resolvable:$false] %s1833_s13 }
  0x84   : > { %s1835_s4 = scalar_lea.vmem %s1834_s13, 256  ;;  %p1836_p0 = scmp.lt.s32.totalorder %s2189_s30, %s1834_s13 }
  0x85   : > { %p1831_p11 = pnand %p1829_p5, %p1815_p12  ;;  %p1837_p1 = scmp.lt.s32.totalorder %s1835_s4, %s1828_s11 }
  0x87   : > { %p1832_p9 = pneg %p1831_p11  ;;  %p1838_p4 = por %p1837_p1, %p1836_p0 }
  0x89   : > { %p1839_p8 = pnand %p1838_p4, %p1832_p9 }
  0x8b   : > { %1842 = shalt.err (!%p1839_p8)
}
  0x8c   : > { %1621 = dma.hbm_to_vmem [thread:$0]  (!%p2193_p7), %s2186_s25, 128, %s2189_s30, %s238_s15  }
  0x8d   : > { %s260_s3 = scalar_lea.vmem [#allocation6], %s2177_s10  ;;  %s257_s17 = scalar_lea.sflag [#allocation7], %s256_s12 }
  0x8e   : > { %s267_s9 = sshll.u32 %s260_s3, 4  ;;  %s1843_s29 = scalar_lea.hbm %s2200_s16, 128  ;;  %s268_s9 = int_to_ptr.vmem [resolvable:$true] %s267_s9 }
  0x8f   : > { %p1844_p2 = scmp.ne.s32.totalorder %s2200_s16, %s1843_s29  ;;  %s1848_s2 = scalar_lea.hbm %s2415_s1, 256 }
  0x90   : > { %p1849_p3 = scmp.lt.u32.totalorder %s2200_s16, %s2415_s1  ;;  %p1850_p5 = scmp.lt.u32.totalorder %s1848_s2, %s1843_s29 }
  0x91   : > { %p1846_p13 = pnand %p1844_p2, %p1815_p12  ;;  %p1852_p9 = scmp.lt.u32.totalorder %s1843_s29, %s2200_s16 }
  0x92   : > { %p1851_p11 = por %p1850_p5, %p1849_p3 }
  0x93   : > { %p1847_p6 = pneg %p1846_p13 }
  0x94   : > { %p1853_p0 = por %p1852_p9, %p1851_p11 }
  0x96   : > { %p1854_p1 = pnand %p1853_p0, %p1847_p6 }
  0x98   : > { %1857 = shalt.err (!%p1854_p1)
}
  0x99   : > { %s1858_s10 = scalar_lea.vmem %s268_s9, 128  ;;  %s1975_s25 = smov [#allocation6]  }
  0x9a   : > { %p1859_p4 = scmp.ne.s32.totalorder %s268_s9, %s1858_s10  ;;  %s1863_s30 = sshll.u32 %s1975_s25, 4  ;;  %s1864_s30 = int_to_ptr.vmem [resolvable:$false] %s1863_s30 }
  0x9b   : > { %s1865_s12 = scalar_lea.vmem %s1864_s30, 256  ;;  %p1866_p13 = scmp.lt.s32.totalorder %s268_s9, %s1864_s30 }
  0x9c   : > { %p1861_p8 = pnand %p1859_p4, %p1815_p12  ;;  %p1867_p10 = scmp.lt.s32.totalorder %s1865_s12, %s1858_s10 }
  0x9e   : > { %p1862_p2 = pneg %p1861_p8  ;;  %p1868_p3 = por %p1867_p10, %p1866_p13 }
  0xa0   : > { %p1869_p5 = pnand %p1868_p3, %p1862_p2 }
  0xa2   : > { %1872 = shalt.err (!%p1869_p5)
}
  0xa3   : > { %1624 = dma.hbm_to_vmem [thread:$0]  (!%p2193_p7), %s2200_s16, 128, %s268_s9, %s257_s17  }
  0xa4   : > { %p2440_p6 = scmp.ne.s32.totalorder %s2431_s28, 0 }
  0xa5   : > { %s2253_s15 = sand.u32 (!%p2440_p6), 1, %s1951_s19   ;;  %p2441_p10 = scmp.ne.s32.totalorder (!%p2440_p6), %s2428_s26, 0 }
  0xa6   : > { %276 = sbr.rel (%p2440_p6) target bundleno = 1744 (0x6d0), region = 40  ;;  %s2256_s3 = sshll.u32 (!%p2440_p6), %s2253_s15, 3 }
  0xa7   : > { %s279_s29 = scalar_lea.sflag (!%p2440_p6), [#allocation4], %s2253_s15  ;;  %s282_s7 = scalar_lea.vmem (!%p2440_p6), [#allocation3], %s2256_s3 }
  0xad   : > { %1926 = dma.done.wait (%p2441_p10), %s279_s29, 128  }
  0xae   : > { %1928 = vsyncadd (%p2441_p10), %s279_s29, 4294967168  ;;  %s287_s28 = sand.u32 1, %s2051_s24   ;;  %s291_s16 = scalar_lea.vmem [#allocation6], %s2256_s3 }
  0xaf   : > { %s288_s8 = scalar_lea.sflag [#allocation7], %s287_s28 }
  0xb0   : > { %1930 = dma.done.wait (%p2441_p10), %s288_s8, 128  }
  0xb1   : > { %1932 = vsyncadd (%p2441_p10), %s288_s8, 4294967168  ;;  %p2442_p7 = scmp.eq.s32.totalorder %s2051_s24, 0 }
  0xb3   : > { %1934 = dma.done.wait (%p2442_p7), [#allocation7], 512   ;;  %p2443_p12 = pmov %p2442_p7 }
  0xb4   : > { %p2444_p11 = pmov %p2442_p7 }
  0xb5   : > { %1936 = vsyncadd (%p2443_p12), [#allocation7], 4294966784 }
  0xb6   : > { %1938 = dma.done.wait (%p2444_p11), [#allocation10], 528   ;;  %p2445_p9 = pmov %p2442_p7 }
  0xb7   : > { %v1976_v0 = vmov 0.0|0.0   ;;  %vm1977_vm0 = vmmov 0   ;;  %v1978_v1 = vmov 0.0   ;;  %v337_v2 = vld [vmem:[#allocation8] sm:$0xff]  ;;  %v338_v3 = vld [vmem:[#allocation8 + $0x8] sm:$0xff]  ;;  %v339_v4 = vld [vmem:[#allocation8 + $0x10] sm:$0xff]  ;;  %v509_v30 = vlaneseq }
  0xb8   : > { %1940 = vsyncadd (%p2445_p9), [#allocation10], 4294966768  ;;  %1578 = vmatprep.subr.bf16.mxu1 %v1976_v0  ;;  %1572 = vmatprep.subr.bf16.mxu0 %v1976_v0  ;;  %v1703_v5 = vpack.i.bf16 %v338_v3, %v337_v2  ;;  %v340_v6 = vld [vmem:[#allocation8 + $0x18] sm:$0xff]  ;;  %v1573_v7 = vpack.c.bf16 %v338_v3, %v337_v2  ;;  %s1979_s24 = smov 96   ;;  %v335_v10 = vld [vmem:[%s282_s7] sm:$0xff]  ;;  %vm345_vm1 = vcmask 261120  }
  0xb9   : > { %1518 = vmatprep.mubr.msk.f32.mxu1 %vm1977_vm0, %v1978_v1  ;;  %1507 = vmatprep.mubr.msk.f32.mxu0 %vm1977_vm0, %v1978_v1  ;;  %v1708_v8 = vpack.i.bf16 %v340_v6, %v339_v4  ;;  %v1576_v9 = vpack.c.bf16 %v340_v6, %v339_v4  ;;  %v336_v19 = vld [vmem:[%s291_s16] sm:$0xff]  ;;  %vm516_vm2 = vcmask 64512   ;;  %s1980_s26 = smov 112   ;;  %s1981_s9 = smov 120   ;;  %v510_v31 = vshrl.u32 %v509_v30, 7 }
  0xba   : > { %1704 = vrot.lane.b32.xlu0 %v1703_v5, %s1979_s24  ;;  %1574 = vmatpush3.bf16.msra.mxu0 %v1573_v7  ;;  %s1982_s17 = smov 104   ;;  %v514_v32 = vand.u32 127, %v509_v30  ;;  %s1983_s11 = smov 80   ;;  %v342_v30 = vld [vmem:[#allocation9 + $0x8] sm:$0xff]  ;;  %vm854_vm4 = vcmask 130112   ;;  %vm1027_vm5 = vcmask 195712  }
  0xbb   : > { %1575 = vmatprep.subr.bf16.mxu0 %v1976_v0  ;;  %s1984_s2 = smov 72   ;;  %s1985_s13 = smov 88   ;;  %vm1200_vm6 = vcmask 261312  }
  0xbc   : > { %vm515_vm3 = vcmp.ge.s32.totalorder %v510_v31, %v514_v32  ;;  %v343_v32 = vld [vmem:[#allocation9 + $0x10] sm:$0xff]  ;;  %s1986_s4 = smov 8   ;;  %s1987_s10 = smov 16  }
  0xbd   : > { %s1988_s25 = smov 24   ;;  %s1465_s30 = sshll.u32 %s1959_s21, 7 }
  0xbe   : > { %1709 = vrot.lane.b32.xlu0 %v1708_v8, %s1979_s24  ;;  %1577 = vmatpush3.bf16.msra.mxu0 %v1576_v9  ;;  %s334_s12 = scalar_lea.vmem [#allocation12], %s2256_s3  ;;  %s2364_s8 = scalar_lea.hbm %s2419_s5, %s1465_s30 }
  0xbf   : > { %1531 = vmatprep.subr.mxu0 %v1978_v1  ;;  %s1299_s29 = sshll.u32 %s334_s12, 4  ;;  %s1285_s16 = scalar_lea.sflag [#allocation5], %s2253_s15  ;;  %s2366_s29 = int_to_ptr.vmem [resolvable:$true] %s1299_s29 }
  0xc0   : > { %p2446_p1 = scmp.ne.s32.totalorder %s2438_s6, 0  ;;  %s1989_s21 = smov [#allocation12]  }
  0xc1   : > { %1508 = vmatmul.mubr.msk.f32.vlgmr.msra.gmra.mrb[0].mxu0 %vm345_vm1, %v335_v10  ;;  %s1877_s3 = sshll.u32 %s1989_s21, 4  ;;  %s1878_s3 = int_to_ptr.vmem [resolvable:$false] %s1877_s3 }
  0xc2   : > { %1533 = vmatprep.mubr.msk.f32.mxu0 %vm1977_vm0, %v1978_v1  ;;  %p1880_p2 = scmp.lt.s32.totalorder %s2366_s29, %s1878_s3 }
 0x12c   : > { %v1705_v11 = vpop.permute.xlu0 %1704 }
 0x12d   : > { %v1707_v12 = vunpack.i.h.bf16 %v1705_v11  ;;  %v1706_v13 = vunpack.i.l.bf16 %v1705_v11 }
 0x12f   : > { %v1579_v14 = vpack.c.bf16 %v1707_v12, %v1706_v13 }
 0x130   : > { %v1710_v15 = vpop.permute.xlu0 %1709 }
 0x131   : > { %v1712_v16 = vunpack.i.h.bf16 %v1710_v15  ;;  %v1711_v17 = vunpack.i.l.bf16 %v1710_v15  ;;  %1580 = vmatpush3.bf16.msra.mxu1 %v1579_v14 }
 0x132   : > { %1581 = vmatprep.subr.bf16.mxu1 %v1976_v0 }
 0x133   : > { %v1582_v18 = vpack.c.bf16 %v1712_v16, %v1711_v17 }
 0x135   : > { %1583 = vmatpush3.bf16.msra.mxu1 %v1582_v18 }
 0x136   : > { %1521 = vmatprep.subr.mxu1 %v1978_v1 }
 0x138   : > { %1519 = vmatmul.mubr.msk.f32.vlgmr.msra.gmra.mrb[0].mxu1 %vm345_vm1, %v336_v19 }
 0x139   : > { %1523 = vmatprep.mubr.msk.f32.mxu1 %vm1977_vm0, %v1978_v1 }
 0x194   : > { %v415_v20 = vpop.f32.mrb[0].mxu0 }
 0x195   : > { %v1509_v21 = vpop.f32.mrb[1].mxu0 }
 0x20b   : > { %v2300_v22 = vpop.f32.mrb[0].mxu1 }
 0x20c   : > { %858 = vrot.lane.b32.xlu0 %v2300_v22, %s1980_s26  ;;  %685 = vrot.lane.b32.xlu1 %v2300_v22, %s1981_s9  ;;  %v1520_v23 = vpop.f32.mrb[1].mxu1 }
 0x20d   : > { %1522 = vmatpush3.xpose.msk.msra.mxu1 %vm516_vm2, %v2300_v22 }
 0x20e   : > { %1526 = vmatprep.subr.mxu1 %v1978_v1 }
 0x210   : > { %1524 = vmatmul.mubr.msk.f32.vlgmr.msra.gmra.mrb[2].mxu1 %vm516_vm2, %v415_v20  ;;  %1031 = vrot.lane.b32.xlu0 %v2300_v22, %s1982_s17 }
 0x211   : > { %683 = vrot.lane.b32.xlu1 %v415_v20, %s1981_s9  ;;  %1528 = vmatprep.mubr.msk.f32.mxu1 %vm1977_vm0, %v1978_v1 }
 0x215   : > { %856 = vrot.lane.b32.xlu1 %v415_v20, %s1980_s26  ;;  %s1879_s26 = scalar_lea.vmem %s1878_s3, 256 }
 0x219   : > { %1029 = vrot.lane.b32.xlu1 %v415_v20, %s1982_s17 }
 0x27e   : > { %v686_v24 = vpop.permute.xlu1 %685  ;;  %v859_v25 = vpop.permute.xlu0 %858 }
 0x27f   : > { %1532 = vmatpush3.xpose.msk.msra.mxu0 %vm516_vm2, %v686_v24 }
 0x280   : > { %1541 = vmatprep.subr.mxu0 %v1978_v1 }
 0x282   : > { %v1032_v28 = vpop.permute.xlu0 %1031 }
 0x283   : > { %v684_v26 = vpop.permute.xlu1 %683 }
 0x284   : > { %1534 = vmatmul.mubr.msk.f32.vlgmr.msra.gmra.mrb[2].mxu0 %vm516_vm2, %v684_v26 }
 0x285   : > { %1542 = vmatpush3.xpose.msk.msra.mxu0 %vm516_vm2, %v859_v25  ;;  %1543 = vmatprep.mubr.msk.f32.mxu0 %vm1977_vm0, %v1978_v1 }
 0x286   : > { %1551 = vmatprep.subr.mxu0 %v1978_v1 }
 0x287   : > { %v857_v27 = vpop.permute.xlu1 %856 }
 0x288   : > { %1544 = vmatmul.mubr.msk.f32.vlgmr.msra.gmra.mrb[4].mxu0 %vm516_vm2, %v857_v27 }
 0x289   : > { %1552 = vmatpush3.xpose.msk.msra.mxu0 %vm516_vm2, %v1032_v28  ;;  %1553 = vmatprep.mubr.msk.f32.mxu0 %vm1977_vm0, %v1978_v1 }
 0x28a   : > { %1584 = vmatprep.subr.bf16.mxu0 %v1976_v0 }
 0x28b   : > { %v1030_v29 = vpop.permute.xlu1 %1029 }
 0x28c   : > { %1554 = vmatmul.mubr.msk.f32.vlgmr.msra.gmra.mrb[6].mxu0 %vm516_vm2, %v1030_v29  ;;  %v341_v29 = vld [vmem:[#allocation9] sm:$0xff] }
 0x28d   : > { %1569 = vmatprep.mubr.msk.f32.mxu0 %vm1977_vm0, %v1978_v1  ;;  %v1585_v31 = vpack.c.bf16 %v342_v30, %v341_v29 }
 0x28f   : > { %1586 = vmatpush3.bf16.msra.mxu0 %v1585_v31 }
 0x290   : > { %1587 = vmatprep.subr.bf16.mxu0 %v1976_v0 }
 0x2e3   : > { %v589_v33 = vpop.f32.mrb[2].mxu1 }
 0x2e4   : > { %v593_v34 = vmul.f32 0.17677669, %v589_v33  ;;  %v1525_v35 = vpop.f32.mrb[3].mxu1  ;;  %v344_v33 = vld [vmem:[#allocation9 + $0x18] sm:$0xff] }
 0x2e6   : > { %v594_v36 = vsel %vm515_vm3, %v593_v34, -3.4028235e+38  ;;  %v1588_v34 = vpack.c.bf16 %v344_v33, %v343_v32 }
 0x2e7   : > { %v595_v37 = vsel %vm516_vm2, %v594_v36, -inf }
 0x2e8   : > { %596 = vmax.xlane.f32.xlu0 %v595_v37  ;;  %1589 = vmatpush3.bf16.msra.mxu0 %v1588_v34 }
 0x357   : > { %v757_v38 = vpop.f32.mrb[2].mxu0 }
 0x358   : > { %v761_v39 = vmul.f32 0.17677669, %v757_v38  ;;  %v1535_v40 = vpop.f32.mrb[3].mxu0 }
 0x35a   : > { %v762_v41 = vsel %vm515_vm3, %v761_v39, -3.4028235e+38 }
 0x35b   : > { %v930_v42 = vpop.f32.mrb[4].mxu0  ;;  %v763_v43 = vsel %vm516_vm2, %v762_v41, -inf }
 0x35c   : > { %v934_v44 = vmul.f32 0.17677669, %v930_v42  ;;  %764 = vmax.xlane.f32.xlu1 %v763_v43  ;;  %v1545_v45 = vpop.f32.mrb[5].mxu0  ;;  %v1462_v43 = vld [vmem:[#allocation11] ss:$0 sm:$0xff] }
 0x35e   : > { %v935_v46 = vsel %vm515_vm3, %v934_v44, -3.4028235e+38 }
 0x35f   : > { %v1103_v47 = vpop.f32.mrb[6].mxu0  ;;  %v936_v48 = vsel %vm516_vm2, %v935_v46, -inf }
 0x360   : > { %v1107_v49 = vmul.f32 0.17677669, %v1103_v47  ;;  %937 = vmax.xlane.f32.xlu0 %v936_v48  ;;  %v1555_v50 = vpop.f32.mrb[7].mxu0 }
 0x362   : > { %v1108_v51 = vsel %vm515_vm3, %v1107_v49, -3.4028235e+38 }
 0x363   : > { %v1109_v52 = vsel %vm516_vm2, %v1108_v51, -inf }
 0x364   : > { %1110 = vmax.xlane.f32.xlu0 %v1109_v52 }
 0x36d   : > { %606 = vrot.lane.b32.xlu1 %v2300_v22, %s1979_s24  ;;  %s1873_s24 = scalar_lea.vmem %s2366_s29, 128 }
 0x36e   : > { %p1874_p0 = scmp.ne.s32.totalorder %s2366_s29, %s1873_s24  ;;  %p1881_p13 = scmp.lt.s32.totalorder %s1879_s26, %s1873_s24 }
 0x370   : > { %p1875_p4 = pnand %p1874_p0, %p2446_p1  ;;  %p1882_p3 = por %p1881_p13, %p1880_p2 }
 0x372   : > { %p1876_p8 = pneg %p1875_p4 }
 0x374   : > { %p1883_p5 = pnand %p1882_p3, %p1876_p8 }
 0x375   : > { %v597_v53 = vpop.xlane.xlu0 %596 }
 0x376   : > { %v598_v54 = vsub.f32 %v594_v36, %v597_v53 }
 0x378   : > { %v599_v55 = vmul.f32 1.442695, %v598_v54 }
 0x37a   : > { %1713 = vpow2.f32 %v599_v55 }
 0x384   : > { %v1714_v56 = vpop.eup %1713 }
 0x385   : > { %v601_v57 = vsel %vm516_vm2, %v1714_v56, 0.0 }
 0x391   : > { %602 = vadd.xlane.f32.xlu1 %v601_v57 }
 0x3e9   : > { %v765_v58 = vpop.xlane.xlu1 %764 }
 0x3ea   : > { %v766_v59 = vsub.f32 %v762_v41, %v765_v58 }
 0x3ec   : > { %v767_v60 = vmul.f32 1.442695, %v766_v59 }
 0x3ed   : > { %v607_v61 = vpop.permute.xlu1 %606  ;;  %v938_v62 = vpop.xlane.xlu0 %937 }
 0x3ee   : > { %1715 = vpow2.f32 %v767_v60  ;;  %v939_v63 = vsub.f32 %v935_v46, %v938_v62  ;;  %1527 = vmatpush3.msra.mxu1 %v607_v61 }
 0x3ef   : > { %1536 = vmatprep.subr.mxu1 %v1978_v1 }
 0x3f0   : > { %v940_v2 = vmul.f32 1.442695, %v939_v63 }
 0x3f1   : > { %v1111_v3 = vpop.xlane.xlu0 %1110 }
 0x3f2   : > { %1717 = vpow2.f32 %v940_v2  ;;  %v1112_v4 = vsub.f32 %v1108_v51, %v1111_v3 }
 0x3f4   : > { %v1113_v5 = vmul.f32 1.442695, %v1112_v4 }
 0x3f6   : > { %1719 = vpow2.f32 %v1113_v5 }
 0x3f8   : > { %v1716_v6 = vpop.eup %1715 }
 0x3f9   : > { %v769_v7 = vsel %vm516_vm2, %v1716_v6, 0.0 }
 0x3fa   : > { %770 = vadd.xlane.f32.xlu0 %v769_v7 }
 0x3fc   : > { %v1718_v8 = vpop.eup %1717 }
 0x3fd   : > { %v942_v9 = vsel %vm516_vm2, %v1718_v8, 0.0 }
 0x3fe   : > { %943 = vadd.xlane.f32.xlu1 %v942_v9 }
 0x400   : > { %v1720_v10 = vpop.eup %1719 }
 0x401   : > { %v1115_v11 = vsel %vm516_vm2, %v1720_v10, 0.0 }
 0x402   : > { %1116 = vadd.xlane.f32.xlu0 %v1115_v11 }
 0x40f   : > { %947 = vrot.lane.b32.xlu1 %v2300_v22, %s1983_s11 }
 0x413   : > { %1120 = vrot.lane.b32.xlu1 %v2300_v22, %s1984_s2 }
 0x418   : > { %774 = vrot.lane.b32.xlu0 %v2300_v22, %s1985_s13 }
 0x41e   : > { %v603_v12 = vpop.xlane.xlu1 %602 }
 0x41f   : > { %1721 = vrcp.f32 %v603_v12 }
 0x429   : > { %v1722_v13 = vpop.eup %1721 }
 0x42a   : > { %v605_v14 = vmul.f32 %v1722_v13, %v1714_v56 }
 0x42c   : > { %1529 = vmatmul.mubr.msk.f32.vlgmr.msra.gmra.mrb[4].mxu1 %vm516_vm2, %v605_v14 }
 0x42d   : > { %1538 = vmatprep.mubr.msk.f32.mxu1 %vm1977_vm0, %v1978_v1 }
 0x487   : > { %v771_v15 = vpop.xlane.xlu0 %770 }
 0x488   : > { %1723 = vrcp.f32 %v771_v15 }
 0x48b   : > { %v944_v16 = vpop.xlane.xlu1 %943 }
 0x48c   : > { %1725 = vrcp.f32 %v944_v16 }
 0x48f   : > { %v1117_v17 = vpop.xlane.xlu0 %1116  ;;  %v948_v20 = vpop.permute.xlu1 %947 }
 0x490   : > { %1727 = vrcp.f32 %v1117_v17 }
 0x492   : > { %v1724_v18 = vpop.eup %1723 }
 0x493   : > { %v773_v19 = vmul.f32 %v1724_v18, %v1716_v6  ;;  %v775_v21 = vpop.permute.xlu0 %774  ;;  %v1121_v24 = vpop.permute.xlu1 %1120 }
 0x494   : > { %1537 = vmatpush3.msra.mxu1 %v775_v21 }
 0x495   : > { %1539 = vmatmul.mubr.msk.f32.vlgmr.msra.gmra.mrb[6].mxu1 %vm516_vm2, %v773_v19  ;;  %1546 = vmatprep.subr.mxu1 %v1978_v1 }
 0x496   : > { %v1726_v22 = vpop.eup %1725  ;;  %1547 = vmatpush3.msra.mxu1 %v948_v20  ;;  %1548 = vmatprep.mubr.msk.f32.mxu1 %vm1977_vm0, %v1978_v1 }
 0x497   : > { %v946_v23 = vmul.f32 %v1726_v22, %v1718_v8  ;;  %1556 = vmatprep.subr.mxu1 %v1978_v1 }
 0x499   : > { %1549 = vmatmul.mubr.msk.f32.vlgmr.msra.gmra.mrb[8].mxu1 %vm516_vm2, %v946_v23 }
 0x49a   : > { %v1728_v25 = vpop.eup %1727  ;;  %1557 = vmatpush3.msra.mxu1 %v1121_v24  ;;  %1558 = vmatprep.mubr.msk.f32.mxu1 %vm1977_vm0, %v1978_v1 }
 0x49b   : > { %v1119_v26 = vmul.f32 %v1728_v25, %v1720_v10 }
 0x49d   : > { %1559 = vmatmul.mubr.msk.f32.vlgmr.msra.gmra.mrb[10].mxu1 %vm516_vm2, %v1119_v26 }
 0x4ff   : > { %v678_v27 = vpop.f32.mrb[4].mxu1 }
 0x500   : > { %682 = vst.msk [vmem:[#allocation2] sm:$0xff] %vm516_vm2, %v678_v27  ;;  %v1530_v28 = vpop.f32.mrb[5].mxu1 }
 0x568   : > { %v846_v35 = vpop.f32.mrb[6].mxu1 }
 0x569   : > { %851 = vrot.lane.b32.xlu0 %v846_v35, %s1986_s4  ;;  %v1540_v1 = vpop.f32.mrb[7].mxu1 }
 0x56c   : > { %v1019_v36 = vpop.f32.mrb[8].mxu1 }
 0x56d   : > { %1024 = vrot.lane.b32.xlu1 %v1019_v36, %s1987_s10  ;;  %v1550_v37 = vpop.f32.mrb[9].mxu1 }
 0x570   : > { %v1192_v38 = vpop.f32.mrb[10].mxu1 }
 0x571   : > { %1197 = vrot.lane.b32.xlu0 %v1192_v38, %s1988_s25  ;;  %v1560_v39 = vpop.f32.mrb[11].mxu1 }
 0x5db   : > { %v852_v40 = vpop.permute.xlu0 %851 }
 0x5dc   : > { %855 = vst.msk [vmem:[#allocation2] sm:$0xff] %vm854_vm4, %v852_v40 }
 0x5df   : > { %v1025_v0 = vpop.permute.xlu1 %1024 }
 0x5e0   : > { %1028 = vst.msk [vmem:[#allocation2] sm:$0xff] %vm1027_vm5, %v1025_v0 }
 0x5e3   : > { %v1198_v41 = vpop.permute.xlu0 %1197 }
 0x5e4   : > { %1201 = vst.msk [vmem:[#allocation2] sm:$0xff] %vm1200_vm6, %v1198_v41 }
 0x5eb   : > { %v1202_v42 = vld [vmem:[#allocation2] sm:$0xff] }
 0x5ec   : > { %1570 = vmatmul.mubr.msk.f32.vlgmr.msra.gmra.mrb[8].mxu0 %vm345_vm1, %v1202_v42 }
 0x6bf   : > { %v1279_v44 = vpop.f32.mrb[8].mxu0 }
 0x6c0   : > { %v1280_v45 = vadd.f32 %v1462_v43, %v1279_v44  ;;  %v1571_v46 = vpop.f32.mrb[9].mxu0 }
 0x6c2   : > { %1283 = vst.msk [vmem:[%s334_s12] sm:$0xff] %vm345_vm1, %v1280_v45 }
 0x6c3   : > { %1886 = shalt.err (!%p1883_p5)
}
 0x6c4   : > { %s1887_s15 = scalar_lea.hbm %s2364_s8, 128  ;;  %s1891_s11 = scalar_lea.hbm %s2419_s5, 256 }
 0x6c5   : > { %p1888_p6 = scmp.ne.s32.totalorder %s2364_s8, %s1887_s15  ;;  %p1892_p12 = scmp.lt.u32.totalorder %s2364_s8, %s2419_s5 }
 0x6c6   : > { %p1893_p11 = scmp.lt.u32.totalorder %s1891_s11, %s1887_s15  ;;  %p1895_p0 = scmp.lt.u32.totalorder %s1887_s15, %s2364_s8 }
 0x6c7   : > { %p1889_p10 = pnand %p1888_p6, %p2446_p1 }
 0x6c8   : > { %p1894_p9 = por %p1893_p11, %p1892_p12 }
 0x6c9   : > { %p1890_p7 = pneg %p1889_p10 }
 0x6ca   : > { %p1896_p4 = por %p1895_p0, %p1894_p9 }
 0x6cc   : > { %p1897_p8 = pnand %p1896_p4, %p1890_p7 }
 0x6ce   : > { %1900 = shalt.err (!%p1897_p8)
}
 0x6cf   : > { %1606 = dma.vmem_to_hbm [thread:$0]  (%p2446_p1), %s2366_s29, 128, %s2364_s8, %s1285_s16  }
 0x6d0 PF: > { %s2447_s4 = sld [smem:[#allocation18_spill]]  ;;  %s1311_s10 = sand.u32 1, %s1947_s18  }
 0x6d1   : > { %p2449_p13 = scmp.ge.s32.totalorder %s1967_s23, 2  ;;  %s1312_s25 = scalar_lea.sflag [#allocation5], %s1311_s10 }
 0x6d6   : > { %p2448_p2 = scmp.ne.s32.totalorder %s2447_s4, 0 }
 0x6d8   : > { %p1626_p3 = pnand %p2449_p13, %p2448_p2 }
 0x6da   : > { %1942 = dma.done.wait (!%p1626_p3), %s1312_s25, 128  }
 0x6db   : > { %1944 = vsyncadd (!%p1626_p3), %s1312_s25, 4294967168  ;;  %s25_s23 = sadd.s32 1, %s1967_s23   ;;  %s2450_s18 = smov %s1951_s19 }
 0x6dc   : > { %p22_p5 = scmp.ge.s32.totalorder %s25_s23, 4   ;;  %s2451_s19 = smov %s1955_s20 }
 0x6dd   : > { %s2452_s20 = smov %s2181_s14  ;;  %s2453_s21 = smov %s1963_s22 }
 0x6de   : > { %s2454_s22 = smov %s2456_s27  ;;  %24 = sbr.rel (!%p22_p5) target bundleno = 13 (0xd), region = 110 }
 0x6e5   :  { %1317 = vsyncpa [#allocation4], 1 }
 0x6e6   :  { %1319 = vsyncpa [#allocation4 + $0x1], 1 }
 0x6e7   :  { %1320 = vsyncpa [#allocation7], 1 }
 0x6e8   :  { %1322 = vsyncpa [#allocation7 + $0x1], 1 }
 0x6e9   :  { %1323 = vsyncpa [#allocation10], 1 }
 0x6ea   :  { %1324 = vsyncpa [#allocation5], 1 }
 0x6eb   :  { %1326 = vsyncpa [#allocation5 + $0x1], 1 }

</bundles_post_ra>
